<compile_context>
chip_gen: v6e
topology: v6e:2x2x1
jax: 0.10.0
libtpu: 0.0.40
codegen_flags: <defaults>
</compile_context>

<pallas_src>
import functools

import jax
import jax.numpy as jnp
from jax.experimental import pallas as pl
from jax.experimental.pallas import tpu as pltpu


def _round_up(n: int, m: int) -> int:
    return ((n + m - 1) // m) * m


def _tpu_generation() -> int:
    """Best-effort TPU generation from device_kind (e.g. 'TPU v5 lite')."""
    try:
        kind = jax.devices()[0].device_kind.lower()
    except Exception:
        return 6
    for g in (7, 6, 5, 4, 3, 2):
        if f"v{g}" in kind:
            return g
    return 6


def _vmem_capacity_bytes() -> int:
    try:
        cap = int(pltpu.get_tpu_info().vmem_capacity_bytes)
    except Exception:
        cap = 64 << 20  # conservative (v7x-sized) fallback
    return max(16 << 20, min(cap, 128 << 20))


def mlp_kernel(x_ref, w1_ref, b1_ref, w2_ref, b2_ref, o_ref, *,
               mxu_dtype, act_dtype):
    # Layer 1: cast x to the MXU input dtype in-register (no HBM-side cast
    # pass), matmul with f32 accumulation.
    x = x_ref[...].astype(mxu_dtype)
    h = jnp.dot(x, w1_ref[...], preferred_element_type=jnp.float32)
    # Bias + tanh in act_dtype: bf16 on v6e/v7x (bf16 VPU/EUP), f32 on v5e.
    h = jnp.tanh(h.astype(act_dtype) + b1_ref[...])
    # Layer 2: matmul with f32 accumulation, f32 bias, cast to output dtype.
    y = jnp.dot(h.astype(mxu_dtype), w2_ref[...],
                preferred_element_type=jnp.float32)
    o_ref[...] = (y + b2_ref[...]).astype(o_ref.dtype)


@functools.partial(jax.jit, static_argnames=("use_bf16", "max_batch_tile"))
def mlp_forward(x, w1, b1, w2, b2, use_bf16=True, max_batch_tile=None):
    """x: (B, dim_in); w1: (dim_in, dim_hid); b1: (dim_hid,)/(1, dim_hid);
       w2: (dim_hid, dim_out); b2: (dim_out,)/(1, dim_out) -> (B, dim_out).
       Weights are stored pre-transposed, so the kernel computes x @ W + b
       (equivalent to PyTorch's x @ W.T + b)."""
    B, dim_in = x.shape
    dim_hid = w1.shape[1]
    dim_out = w2.shape[1]
    out_dtype = x.dtype

    gen = _tpu_generation()
    vmem_cap = _vmem_capacity_bytes()
    budget_bytes = int(vmem_cap * 0.70)       # ~45 MiB v7x, ~90 MiB v5e/v6e
    vmem_limit = min(int(vmem_cap * 0.85), vmem_cap - (2 << 20))

    mxu_dtype = jnp.bfloat16 if use_bf16 else jnp.float32
    # bf16 activation math only where VPU/EUP have a bf16 path (>= v6e).
    act_dtype = jnp.bfloat16 if (use_bf16 and gen >= 6) else jnp.float32

    # Weights / biases: one-time cast in the wrapper (tiny, grid-resident).
    w1c = w1.astype(mxu_dtype)
    w2c = w2.astype(mxu_dtype)
    b1c = b1.reshape(1, dim_hid).astype(act_dtype)
    b2c = b2.reshape(1, dim_out).astype(jnp.float32)

    x_bytes = jnp.dtype(x.dtype).itemsize
    out_bytes = jnp.dtype(out_dtype).itemsize
    mxu_bytes = jnp.dtype(mxu_dtype).itemsize
    act_bytes = jnp.dtype(act_dtype).itemsize

    # Resident operands (pipeline default double-buffers them -> 2 copies).
    fixed_bytes = 2 * ((dim_in * dim_hid + dim_hid * dim_out) * mxu_bytes
                       + dim_hid * act_bytes + dim_out * 4)
    # Per-batch-row VMEM: double-buffered x/out tiles + in-kernel temporaries.
    row_bytes = (2 * dim_in * x_bytes          # x tile (double-buffered)
                 + 2 * dim_out * out_bytes     # out tile (double-buffered)
                 + dim_in * mxu_bytes          # in-kernel bf16 copy of x
                 + dim_hid * (4 + act_bytes)   # f32 acc + act-dtype h
                 + dim_out * 4)                # f32 acc of layer 2

    # Largest batch tile fitting the per-generation VMEM budget.
    tb = 8192
    while tb > 8 and fixed_bytes + tb * row_bytes > budget_bytes:
        tb //= 2
    tb = max(8, min(tb, _round_up(B, 8)))
    if max_batch_tile is not None:
        tb = max(8, min(tb, _round_up(int(max_batch_tile), 8)))
    # Chips with 2 TensorCores (v7x, v4 megacore): ensure >= 2 grid tiles so
    # the "parallel" batch axis shards across both cores.
    if (gen >= 7 or gen == 4) and pl.cdiv(B, tb) < 2 and tb >= 16:
        tb = max(8, _round_up(pl.cdiv(B, 2), 8))

    num_tiles = pl.cdiv(B, tb)

    cost = pl.CostEstimate(
        flops=2 * B * dim_in * dim_hid + 2 * B * dim_hid * dim_out,
        transcendentals=B * dim_hid,
        bytes_accessed=(B * dim_in * x_bytes
                        + (dim_in * dim_hid + dim_hid * dim_out) * mxu_bytes
                        + dim_hid * act_bytes + dim_out * 4
                        + B * dim_out * out_bytes),
    )

    kernel = functools.partial(mlp_kernel, mxu_dtype=mxu_dtype,
                               act_dtype=act_dtype)

    y = pl.pallas_call(
        kernel,
        out_shape=jax.ShapeDtypeStruct((B, dim_out), out_dtype),
        grid_spec=pl.GridSpec(
            grid=(num_tiles,),
            in_specs=[
                pl.BlockSpec((tb, dim_in), lambda i: (i, 0)),      # x tile
                pl.BlockSpec((dim_in, dim_hid), lambda i: (0, 0)),  # W1 (resident)
                pl.BlockSpec((1, dim_hid), lambda i: (0, 0)),       # b1
                pl.BlockSpec((dim_hid, dim_out), lambda i: (0, 0)), # W2 (resident)
                pl.BlockSpec((1, dim_out), lambda i: (0, 0)),       # b2
            ],
            out_specs=pl.BlockSpec((tb, dim_out), lambda i: (i, 0)),
        ),
        compiler_params=pltpu.CompilerParams(
            dimension_semantics=("parallel",),
            vmem_limit_bytes=vmem_limit,
        ),
        cost_estimate=cost,
    )(x, w1c, b1c, w2c, b2c)

    return y


def init_mlp_params(key, dim_in, dim_out, dim_hid=None, dtype=jnp.float32):
    """Mirror nn.Linear default init: U(-1/sqrt(fan_in), 1/sqrt(fan_in))."""
    if dim_hid is None:
        dim_hid = dim_in * 2
    k1, k2, k3, k4 = jax.random.split(key, 4)
    bound1 = 1.0 / jnp.sqrt(dim_in)
    bound2 = 1.0 / jnp.sqrt(dim_hid)
    w1 = jax.random.uniform(k1, (dim_in, dim_hid), dtype, -bound1, bound1)
    b1 = jax.random.uniform(k2, (1, dim_hid), dtype, -bound1, bound1)
    w2 = jax.random.uniform(k3, (dim_hid, dim_out), dtype, -bound2, bound2)
    b2 = jax.random.uniform(k4, (1, dim_out), dtype, -bound2, bound2)
    return w1, b1, w2, b2


def _reference(x, w1, b1, w2, b2):
    return jnp.tanh(x @ w1 + b1) @ w2 + b2


if __name__ == "__main__":
    key = jax.random.PRNGKey(0)

    # --- Small case matching the module defaults (dim_hid = dim_in * 2). ---
    kx, kp, key = jax.random.split(key, 3)
    batch, dim_in, dim_out = 8, 32, 16
    x = jax.random.normal(kx, (batch, dim_in), jnp.float32)
    w1, b1, w2, b2 = init_mlp_params(kp, dim_in, dim_out)

    y_ref = _reference(x, w1, b1, w2, b2)

    # Full-f32 path: tight check against the pure-JAX reference.
    y_f32 = mlp_forward(x, w1, b1, w2, b2, use_bf16=False)
    jax.block_until_ready(y_f32)
    assert y_f32.shape == (batch, dim_out)
    assert jnp.allclose(y_f32, y_ref, atol=1e-5, rtol=1e-5)

    # bf16-MXU path (default): loosened tolerance, f32 accumulation bounds error.
    y_bf16 = mlp_forward(x, w1, b1, w2, b2)
    jax.block_until_ready(y_bf16)
    assert y_bf16.shape == (batch, dim_out)
    assert jnp.allclose(y_bf16, y_ref, atol=3e-2, rtol=3e-2)

    # --- Larger case: multi-tile grid, ragged last block, non-128 dims. ---
    kx2, kp2 = jax.random.split(key)
    batch2, dim_in2, dim_out2 = 1000, 96, 48          # dim_hid2 = 192
    x2 = jax.random.normal(kx2, (batch2, dim_in2), jnp.float32)
    w1b, b1b, w2b, b2b = init_mlp_params(kp2, dim_in2, dim_out2)

    y2 = mlp_forward(x2, w1b, b1b, w2b, b2b, max_batch_tile=256)
    jax.block_until_ready(y2)
    y2_ref = _reference(x2, w1b, b1b, w2b, b2b)
    assert y2.shape == (batch2, dim_out2)
    assert jnp.allclose(y2, y2_ref, atol=3e-2, rtol=3e-2)

    print("KERNEL_OK")
</pallas_src>

<mosaic_0001>
module attributes {stable_mosaic.version = 11 : i64} {
  func.func @mlp_kernel(%arg0: i32, %arg1: memref<8x32xf32, #tpu.memory_space<vmem>>, %arg2: memref<32x64xf32, #tpu.memory_space<vmem>>, %arg3: memref<1x64xf32, #tpu.memory_space<vmem>>, %arg4: memref<64x16xf32, #tpu.memory_space<vmem>>, %arg5: memref<1x16xf32, #tpu.memory_space<vmem>>, %arg6: memref<8x16xf32, #tpu.memory_space<vmem>>) attributes {dimension_semantics = [#tpu.dimension_semantics<parallel>], iteration_bounds = array<i64: 1>, scalar_prefetch = 0 : i64, scratch_operands = 0 : i64, tpu.core_type = #tpu.core_type<tc>, window_params = [{transform_indices = @transform_0, window_bounds = array<i64: 8, 32>}, {pipeline_mode = #tpu.pipeline_mode<synchronous>, transform_indices = @transform_1, window_bounds = array<i64: 32, 64>}, {pipeline_mode = #tpu.pipeline_mode<synchronous>, transform_indices = @transform_2, window_bounds = array<i64: 1, 64>}, {pipeline_mode = #tpu.pipeline_mode<synchronous>, transform_indices = @transform_3, window_bounds = array<i64: 64, 16>}, {pipeline_mode = #tpu.pipeline_mode<synchronous>, transform_indices = @transform_4, window_bounds = array<i64: 1, 16>}, {transform_indices = @transform_5, window_bounds = array<i64: 8, 16>}]} {
    %c0 = arith.constant 0 : index
    %c0_0 = arith.constant 0 : index
    %0 = vector.load %arg1[%c0, %c0_0] : memref<8x32xf32, #tpu.memory_space<vmem>>, vector<8x32xf32>
    %c0_1 = arith.constant 0 : index
    %c0_2 = arith.constant 0 : index
    %1 = vector.load %arg2[%c0_1, %c0_2] : memref<32x64xf32, #tpu.memory_space<vmem>>, vector<32x64xf32>
    %cst = arith.constant dense<0.000000e+00> : vector<8x64xf32>
    %2 = tpu.matmul %0, %1, %cst {dimension_numbers = #tpu.dot_dimension_numbers<[1], [0], [0], [1], [0, 0, 1, 1], [], []>} : vector<8x32xf32>, vector<32x64xf32>, vector<8x64xf32> -> vector<8x64xf32>
    %c0_3 = arith.constant 0 : index
    %c0_4 = arith.constant 0 : index
    %3 = vector.load %arg3[%c0_3, %c0_4] : memref<1x64xf32, #tpu.memory_space<vmem>>, vector<1x64xf32>
    %4 = vector.broadcast %3 : vector<1x64xf32> to vector<8x64xf32>
    %5 = arith.addf %2, %4 : vector<8x64xf32>
    %6 = math.tanh %5 : vector<8x64xf32>
    %c0_5 = arith.constant 0 : index
    %c0_6 = arith.constant 0 : index
    %7 = vector.load %arg4[%c0_5, %c0_6] : memref<64x16xf32, #tpu.memory_space<vmem>>, vector<64x16xf32>
    %cst_7 = arith.constant dense<0.000000e+00> : vector<8x16xf32>
    %8 = tpu.matmul %6, %7, %cst_7 {dimension_numbers = #tpu.dot_dimension_numbers<[1], [0], [0], [1], [0, 0, 1, 1], [], []>} : vector<8x64xf32>, vector<64x16xf32>, vector<8x16xf32> -> vector<8x16xf32>
    %c0_8 = arith.constant 0 : index
    %c0_9 = arith.constant 0 : index
    %9 = vector.load %arg5[%c0_8, %c0_9] : memref<1x16xf32, #tpu.memory_space<vmem>>, vector<1x16xf32>
    %10 = vector.broadcast %9 : vector<1x16xf32> to vector<8x16xf32>
    %11 = arith.addf %8, %10 : vector<8x16xf32>
    %c0_10 = arith.constant 0 : index
    %c0_11 = arith.constant 0 : index
    %12 = vector.load %arg6[%c0_10, %c0_11] : memref<8x16xf32, #tpu.memory_space<vmem>>, vector<8x16xf32>
    tpu.vector_store %arg6[%c0_10, %c0_11], %11 {strides = array<i32>} : memref<8x16xf32, #tpu.memory_space<vmem>>, vector<8x16xf32>,
    return
  }
  func.func @transform_0(%arg0: i32) -> (i32, i32) {
    %c0_i32 = arith.constant 0 : i32
    %c0_i32_0 = arith.constant 0 : i32
    return %arg0, %c0_i32 : i32, i32
  }
  func.func @transform_1(%arg0: i32) -> (i32, i32) {
    %c0_i32 = arith.constant 0 : i32
    %c0_i32_0 = arith.constant 0 : i32
    %c0_i32_1 = arith.constant 0 : i32
    return %c0_i32, %c0_i32_0 : i32, i32
  }
  func.func @transform_2(%arg0: i32) -> (i32, i32) {
    %c0_i32 = arith.constant 0 : i32
    %c0_i32_0 = arith.constant 0 : i32
    %c0_i32_1 = arith.constant 0 : i32
    return %c0_i32, %c0_i32_0 : i32, i32
  }
  func.func @transform_3(%arg0: i32) -> (i32, i32) {
    %c0_i32 = arith.constant 0 : i32
    %c0_i32_0 = arith.constant 0 : i32
    %c0_i32_1 = arith.constant 0 : i32
    return %c0_i32, %c0_i32_0 : i32, i32
  }
  func.func @transform_4(%arg0: i32) -> (i32, i32) {
    %c0_i32 = arith.constant 0 : i32
    %c0_i32_0 = arith.constant 0 : i32
    %c0_i32_1 = arith.constant 0 : i32
    return %c0_i32, %c0_i32_0 : i32, i32
  }
  func.func @transform_5(%arg0: i32) -> (i32, i32) {
    %c0_i32 = arith.constant 0 : i32
    %c0_i32_0 = arith.constant 0 : i32
    return %arg0, %c0_i32 : i32, i32
  }
}

</mosaic_0001>

<bundles_post_ra>
// kernel: mlp_forward.1
= control target key start
LH: loop header
LB: loop body
LE: loop exit
PB: predicated region body
PF: predicated region fallthrough
CT: control target
= control target key end

     0   :  { %v288_v1 = vmov 0.0   ;;  %vm289_vm0 = vmmov 0   ;;  %s369_s0 = inlined_call_operand.vmem [shape: f32[8,32], index: 0, kind: input, shape index: {}]   ;;  %s370_s1 = inlined_call_operand.vmem [shape: f32[32,64], index: 1, kind: input, shape index: {}]   ;;  %s371_s2 = inlined_call_operand.vmem [shape: f32[1,64], index: 2, kind: input, shape index: {}]   ;;  %s372_s3 = inlined_call_operand.vmem [shape: f32[64,16], index: 3, kind: input, shape index: {}]   ;;  %s373_s4 = inlined_call_operand.vmem [shape: f32[1,16], index: 4, kind: input, shape index: {}]   ;;  %s374_s5 = inlined_call_operand.hbm [shape: f32[8,16], index: 5, kind: output, shape index: {}]  }
   0x1   :  { %v25_v0 = vld [vmem:[%s370_s1 + $0x18] sm:$0xff]  ;;  %231 = vmatprep.subr.mxu0 %v288_v1  ;;  %v24_v2 = vld [vmem:[%s370_s1 + $0x10] sm:$0xff]  ;;  %239 = vmatprep.mubr.msk.f32.mxu0 %vm289_vm0, %v288_v1 }
   0x2   :  { %232 = vmatpush3.msra.mxu0 %v25_v0  ;;  %242 = vmatprep.subr.mxu1 %v288_v1 }
   0x3   :  { %10 = vsyncpa [#allocation3], 0  ;;  %233 = vmatprep.subr.mxu0 %v288_v1  ;;  %v23_v3 = vld [vmem:[%s370_s1 + $0x8] sm:$0xff]  ;;  %258 = vmatprep.mubr.msk.f32.mxu1 %vm289_vm0, %v288_v1  ;;  %v22_v4 = vld [vmem:[%s370_s1] sm:$0xff]  ;;  %vm33_vm1 = vcmask 261120   ;;  %vm123_vm2 = vcmask 523264  }
   0x4   :  { %234 = vmatpush3.msra.mxu0 %v24_v2  ;;  %v21_v5 = vld [vmem:[%s369_s0] sm:$0xff]  ;;  %v115_v6 = vld [vmem:[%s372_s3 + $0x38] sm:$0xff]  ;;  %v114_v7 = vld [vmem:[%s372_s3 + $0x30] sm:$0xff]  ;;  %s290_s21 = smov [#allocation2]   ;;  %vm197_vm3 = vcmask 130048  }
   0x5   :  { %235 = vmatprep.subr.mxu0 %v288_v1  ;;  %243 = vmatpush3.msra.mxu1 %v115_v6  ;;  %v113_v8 = vld [vmem:[%s372_s3 + $0x28] sm:$0xff]  ;;  %v112_v9 = vld [vmem:[%s372_s3 + $0x20] sm:$0xff]  ;;  %v111_v10 = vld [vmem:[%s372_s3 + $0x18] sm:$0xff] }
   0x6   :  { %236 = vmatpush3.msra.mxu0 %v23_v3  ;;  %244 = vmatprep.subr.mxu1 %v288_v1  ;;  %v110_v11 = vld [vmem:[%s372_s3 + $0x10] sm:$0xff]  ;;  %v109_v12 = vld [vmem:[%s372_s3 + $0x8] sm:$0xff]  ;;  %v108_v13 = vld [vmem:[%s372_s3] sm:$0xff]  ;;  %s205_s3 = sshll.u32 %s290_s21, 4  ;;  %s206_s3 = int_to_ptr.vmem [resolvable:$true] %s205_s3 }
   0x7   :  { %237 = vmatprep.subr.mxu0 %v288_v1  ;;  %245 = vmatpush3.msra.mxu1 %v114_v7  ;;  %v213_v14 = vld [vmem:[%s371_s2] ss:$0 sm:$0xff]  ;;  %s266_s2 = scalar_lea.vmem %s206_s3, 128  ;;  %p271_p1 = scmp.lt.s32.totalorder %s206_s3, %s206_s3 }
   0x8   :  { %238 = vmatpush3.msra.mxu0 %v22_v4  ;;  %246 = vmatprep.subr.mxu1 %v288_v1  ;;  %v215_v19 = vld [vmem:[%s373_s4] ss:$0 sm:$0xff]  ;;  %p267_p0 = scmp.ne.s32.totalorder %s206_s3, %s266_s2  ;;  %p272_p2 = scmp.lt.s32.totalorder %s266_s2, %s266_s2 }
   0x9   :  { %240 = vmatmul.mubr.msk.f32.vlgmr.msra.gmra.mxu0 %vm33_vm1, %v21_v5  ;;  %247 = vmatpush3.msra.mxu1 %v113_v8 }
   0xa   :  { %248 = vmatprep.subr.mxu1 %v288_v1  ;;  %p273_p3 = por %p272_p2, %p271_p1 }
   0xb   :  { %249 = vmatpush3.msra.mxu1 %v112_v9 }
   0xc   :  { %250 = vmatprep.subr.mxu1 %v288_v1  ;;  %p274_p4 = pnand %p273_p3, %p267_p0 }
   0xd   :  { %251 = vmatpush3.msra.mxu1 %v111_v10 }
   0xe   :  { %252 = vmatprep.subr.mxu1 %v288_v1 }
   0xf   :  { %253 = vmatpush3.msra.mxu1 %v110_v11 }
  0x10   :  { %254 = vmatprep.subr.mxu1 %v288_v1 }
  0x11   :  { %255 = vmatpush3.msra.mxu1 %v109_v12 }
  0x12   :  { %256 = vmatprep.subr.mxu1 %v288_v1 }
  0x13   :  { %257 = vmatpush3.msra.mxu1 %v108_v13 }
  0xc9   :  { %v103_v15 = vpop.f32.mrf.mxu0 }
  0xca   :  { %v104_v16 = vadd.f32 %v213_v14, %v103_v15 }
  0xcb   :  { %v241_v17 = vpop.f32.mrf.mxu0 }
  0xcc   :  { %264 = vtanh.f32 %v104_v16 }
  0xd9   :  { %v265_v18 = vpop.eup %264 }
  0xda   :  { %259 = vmatmul.mubr.msk.f32.vlgmr.msra.gmra.mxu1 %vm123_vm2, %v265_v18 }
 0x19a   :  { %v193_v20 = vpop.f32.mrf.mxu1 }
 0x19b   :  { %v194_v21 = vadd.f32 %v215_v19, %v193_v20 }
 0x19c   :  { %v260_v22 = vpop.f32.mrf.mxu1 }
 0x19d   :  { %198 = vst.msk [vmem:[#allocation2] sm:$0xff] %vm197_vm3, %v194_v21 }
 0x19e   :  { %277 = shalt.err (!%p274_p4)
}
 0x19f   :  { %208 = dma.vmem_to_hbm [thread:$0]  %s206_s3, 128, %s374_s5, [#allocation3]  }
 0x1a0   :  { %286 = dma.done.wait [#allocation3], 128  }
 0x1a1   :  { %287 = vsyncadd [#allocation3], 4294967168 }
 0x1a2   :  { %212 = vsyncpa [#allocation3], 1 }

</bundles_post_ra>
